<compile_context>
chip_gen: v6e
topology: v6e:2x2x1
jax: 0.10.0
libtpu: 0.0.40
codegen_flags: <defaults>
</compile_context>

<pallas_src>
import jax
import jax.numpy as jnp
from jax.experimental import pallas as pl
from jax.experimental.pallas import tpu as pltpu


def _round_up(x: int, m: int) -> int:
    return (x + m - 1) // m * m


def _sublane_multiple(dtype) -> int:
    # f32 -> 8, bf16 -> 16, int8/fp8 -> 32 rows per packed vreg tile.
    return max(8, 32 // jnp.dtype(dtype).itemsize)


def _pick_tile(dim: int, align: int, candidates=(512, 256, 128)) -> int:
    """Tile size minimizing padding of `dim`; small dims stay whole (aligned)."""
    if dim <= candidates[-1]:
        return _round_up(dim, align)
    best_pad, best_tile = None, None
    for c in candidates:
        pad = _round_up(dim, c) - dim
        if best_pad is None or pad < best_pad:
            best_pad, best_tile = pad, c
    return best_tile


def _pad2d(a, rows: int, cols: int):
    r, c = a.shape
    if r == rows and c == cols:
        return a                      # skip the HBM copy when already aligned
    return jnp.zeros((rows, cols), a.dtype).at[:r, :c].set(a)


def mlp_kernel(x_ref, w1_ref, w2_ref, o_ref, h_ref):
    # First matmul + ReLU computed once per M tile (at the first N tile),
    # cached in a VMEM f32 scratch and reused for every N tile.
    @pl.when(pl.program_id(1) == 0)
    def _():
        h = jnp.dot(x_ref[...], w1_ref[...], preferred_element_type=jnp.float32)
        h_ref[...] = jnp.maximum(h, 0.0)          # torch.clamp(min=0)

    h = h_ref[...]
    if w2_ref.dtype != jnp.float32:
        # Feed the MXU native-precision operands (e.g. bf16); f32 accumulation.
        h = h.astype(w2_ref.dtype)
    o_ref[...] = jnp.dot(h, w2_ref[...],
                         preferred_element_type=jnp.float32).astype(o_ref.dtype)


def fused_mlp(x, w1, w2, *, tm_max: int = 512, tn_max: int = 512):
    M, K = x.shape
    K2, H = w1.shape
    H2, N = w2.shape
    assert K == K2 and H == H2, "inner dimensions must match"

    sub = _sublane_multiple(x.dtype)

    # Lane-dense padding: last dims multiples of 128, M a multiple of tm.
    Kp = _round_up(K, 128)
    Hp = _round_up(H, 128)

    tm = min(_pick_tile(M, sub), tm_max)
    tm = _round_up(tm, sub)
    Mp = _round_up(M, tm)

    tn = min(_pick_tile(N, 128), tn_max)
    tn = _round_up(tn, 128)
    Np = _round_up(N, tn)

    grid_m = Mp // tm
    grid_n = Np // tn

    x_p = _pad2d(x, Mp, Kp)
    w1_p = _pad2d(w1, Kp, Hp)
    w2_p = _pad2d(w2, Hp, Np)

    isz_x = jnp.dtype(x.dtype).itemsize
    isz_w1 = jnp.dtype(w1.dtype).itemsize
    isz_w2 = jnp.dtype(w2.dtype).itemsize

    # Advisory cost for XLA's scheduler (padded shapes actually executed).
    flops = 2 * Mp * Kp * Hp + 2 * Mp * Hp * Np
    w2_bytes = Hp * Np * isz_w2 * (grid_m if grid_n > 1 else 1)
    bytes_accessed = (Mp * Kp * isz_x + Kp * Hp * isz_w1 + w2_bytes
                      + Mp * Np * isz_x)

    def _run(single_buffer_weights: bool):
        w2_bufs = 2
        if single_buffer_weights:
            w1_spec = pl.BlockSpec((Kp, Hp), lambda i, j: (0, 0),
                                   pipeline_mode=pl.Buffered(1))
            if grid_n == 1:
                # w2 block never changes either -> single buffer is safe.
                w2_spec = pl.BlockSpec((Hp, tn), lambda i, j: (0, j),
                                       pipeline_mode=pl.Buffered(1))
                w2_bufs = 1
            else:
                w2_spec = pl.BlockSpec((Hp, tn), lambda i, j: (0, j))
        else:
            w1_spec = pl.BlockSpec((Kp, Hp), lambda i, j: (0, 0))
            w2_spec = pl.BlockSpec((Hp, tn), lambda i, j: (0, j))
        w1_bufs = 1 if single_buffer_weights else 2

        # VMEM budget: pipelined x/out tiles + weights + f32 hidden scratch.
        vmem_bytes = (2 * tm * Kp * isz_x
                      + w1_bufs * Kp * Hp * isz_w1
                      + w2_bufs * Hp * tn * isz_w2
                      + 2 * tm * tn * isz_x
                      + tm * Hp * 4)
        vmem_limit = int(min(max(int(vmem_bytes * 1.3) + (2 << 20), 32 << 20),
                             128 << 20))

        return pl.pallas_call(
            mlp_kernel,
            out_shape=jax.ShapeDtypeStruct((Mp, Np), x.dtype),
            grid=(grid_m, grid_n),
            in_specs=[
                pl.BlockSpec((tm, Kp), lambda i, j: (i, 0)),   # x tile over M
                w1_spec,                                        # w1 resident
                w2_spec,                                        # w2 tile over N
            ],
            out_specs=pl.BlockSpec((tm, tn), lambda i, j: (i, j)),
            scratch_shapes=[pltpu.VMEM((tm, Hp), jnp.float32)],  # relu(x@w1)
            compiler_params=pltpu.CompilerParams(
                dimension_semantics=("parallel", "arbitrary"),
                vmem_limit_bytes=vmem_limit,
            ),
            cost_estimate=pl.CostEstimate(
                flops=flops, transcendentals=0, bytes_accessed=bytes_accessed),
        )(x_p, w1_p, w2_p)

    try:
        out_p = _run(single_buffer_weights=True)
    except Exception:
        # Fallback if this JAX build rejects single-buffered BlockSpecs.
        out_p = _run(single_buffer_weights=False)

    if Mp == M and Np == N:
        return out_p
    return out_p[:M, :N]


if __name__ == "__main__":
    key = jax.random.PRNGKey(0)
    k1, k2, k3 = jax.random.split(key, 3)

    # Small shapes consistent with the module's forward (mm -> clamp -> mm).
    M, K, H, N = 8, 32, 64, 16
    x = jax.random.normal(k1, (M, K), dtype=jnp.float32)
    w1 = jax.random.normal(k2, (K, H), dtype=jnp.float32)
    w2 = jax.random.normal(k3, (H, N), dtype=jnp.float32)

    out = fused_mlp(x, w1, w2)
    jax.block_until_ready(out)
    ref = jnp.maximum(x @ w1, 0.0) @ w2
    assert out.shape == (M, N)
    assert jnp.allclose(out, ref, atol=1e-4, rtol=1e-4)

    # Second check: ragged shapes exercising the M grid + padding/slice paths.
    k4, k5, k6 = jax.random.split(k3, 3)
    M2, K2_, H2_, N2 = 300, 96, 160, 72
    x2 = jax.random.normal(k4, (M2, K2_), dtype=jnp.float32)
    w1b = jax.random.normal(k5, (K2_, H2_), dtype=jnp.float32)
    w2b = jax.random.normal(k6, (H2_, N2), dtype=jnp.float32)
    out2 = fused_mlp(x2, w1b, w2b)
    jax.block_until_ready(out2)
    ref2 = jnp.maximum(x2 @ w1b, 0.0) @ w2b
    assert out2.shape == (M2, N2)
    assert jnp.allclose(out2, ref2, atol=1e-3, rtol=1e-3)

    print("KERNEL_OK")
</pallas_src>

<mosaic_0001>
module attributes {stable_mosaic.version = 11 : i64} {
  func.func @mlp_kernel(%arg0: i32, %arg1: i32, %arg2: memref<8x128xf32, #tpu.memory_space<vmem>>, %arg3: memref<128x128xf32, #tpu.memory_space<vmem>>, %arg4: memref<128x128xf32, #tpu.memory_space<vmem>>, %arg5: memref<8x128xf32, #tpu.memory_space<vmem>>, %arg6: memref<8x128xf32, #tpu.memory_space<vmem>>) attributes {dimension_semantics = [#tpu.dimension_semantics<parallel>, #tpu.dimension_semantics<arbitrary>], iteration_bounds = array<i64: 1, 1>, scalar_prefetch = 0 : i64, scratch_operands = 1 : i64, tpu.core_type = #tpu.core_type<tc>, window_params = [{transform_indices = @transform_0, window_bounds = array<i64: 8, 128>}, {pipeline_mode = #tpu.pipeline_mode<synchronous>, transform_indices = @transform_1, window_bounds = array<i64: 128, 128>}, {pipeline_mode = #tpu.pipeline_mode<synchronous>, transform_indices = @transform_2, window_bounds = array<i64: 128, 128>}, {transform_indices = @transform_3, window_bounds = array<i64: 8, 128>}]} {
    %c0_i32 = arith.constant 0 : i32
    %0 = arith.cmpi eq, %arg1, %c0_i32 : i32
    %1 = arith.extui %0 : i1 to i32
    %c0_i32_0 = arith.constant 0 : i32
    %2 = arith.cmpi ne, %1, %c0_i32_0 : i32
    scf.if %2 {
      %c0_6 = arith.constant 0 : index
      %c0_7 = arith.constant 0 : index
      %7 = vector.load %arg2[%c0_6, %c0_7] : memref<8x128xf32, #tpu.memory_space<vmem>>, vector<8x128xf32>
      %c0_8 = arith.constant 0 : index
      %c0_9 = arith.constant 0 : index
      %8 = vector.load %arg3[%c0_8, %c0_9] : memref<128x128xf32, #tpu.memory_space<vmem>>, vector<128x128xf32>
      %cst_10 = arith.constant dense<0.000000e+00> : vector<8x128xf32>
      %9 = tpu.matmul %7, %8, %cst_10 {dimension_numbers = #tpu.dot_dimension_numbers<[1], [0], [0], [1], [0, 0, 1, 1], [], []>} : vector<8x128xf32>, vector<128x128xf32>, vector<8x128xf32> -> vector<8x128xf32>
      %cst_11 = arith.constant 0.000000e+00 : f32
      %10 = vector.broadcast %cst_11 : f32 to vector<8x128xf32>
      %11 = arith.maximumf %9, %10 : vector<8x128xf32>
      %c0_12 = arith.constant 0 : index
      %c0_13 = arith.constant 0 : index
      %12 = vector.load %arg6[%c0_12, %c0_13] : memref<8x128xf32, #tpu.memory_space<vmem>>, vector<8x128xf32>
      tpu.vector_store %arg6[%c0_12, %c0_13], %11 {strides = array<i32>} : memref<8x128xf32, #tpu.memory_space<vmem>>, vector<8x128xf32>,
    } else {
    }
    %c0 = arith.constant 0 : index
    %c0_1 = arith.constant 0 : index
    %3 = vector.load %arg6[%c0, %c0_1] : memref<8x128xf32, #tpu.memory_space<vmem>>, vector<8x128xf32>
    %c0_2 = arith.constant 0 : index
    %c0_3 = arith.constant 0 : index
    %4 = vector.load %arg4[%c0_2, %c0_3] : memref<128x128xf32, #tpu.memory_space<vmem>>, vector<128x128xf32>
    %cst = arith.constant dense<0.000000e+00> : vector<8x128xf32>
    %5 = tpu.matmul %3, %4, %cst {dimension_numbers = #tpu.dot_dimension_numbers<[1], [0], [0], [1], [0, 0, 1, 1], [], []>} : vector<8x128xf32>, vector<128x128xf32>, vector<8x128xf32> -> vector<8x128xf32>
    %c0_4 = arith.constant 0 : index
    %c0_5 = arith.constant 0 : index
    %6 = vector.load %arg5[%c0_4, %c0_5] : memref<8x128xf32, #tpu.memory_space<vmem>>, vector<8x128xf32>
    tpu.vector_store %arg5[%c0_4, %c0_5], %5 {strides = array<i32>} : memref<8x128xf32, #tpu.memory_space<vmem>>, vector<8x128xf32>,
    return
  }
  func.func @transform_0(%arg0: i32, %arg1: i32) -> (i32, i32) {
    %c0_i32 = arith.constant 0 : i32
    %c0_i32_0 = arith.constant 0 : i32
    return %arg0, %c0_i32 : i32, i32
  }
  func.func @transform_1(%arg0: i32, %arg1: i32) -> (i32, i32) {
    %c0_i32 = arith.constant 0 : i32
    %c0_i32_0 = arith.constant 0 : i32
    %c0_i32_1 = arith.constant 0 : i32
    return %c0_i32, %c0_i32_0 : i32, i32
  }
  func.func @transform_2(%arg0: i32, %arg1: i32) -> (i32, i32) {
    %c0_i32 = arith.constant 0 : i32
    %c0_i32_0 = arith.constant 0 : i32
    return %c0_i32, %arg1 : i32, i32
  }
  func.func @transform_3(%arg0: i32, %arg1: i32) -> (i32, i32) {
    %c0_i32 = arith.constant 0 : i32
    return %arg0, %arg1 : i32, i32
  }
}

module attributes {stable_mosaic.version = 11 : i64} {
  func.func @mlp_kernel(%arg0: i32, %arg1: i32, %arg2: memref<8x128xf32, #tpu.memory_space<vmem>>, %arg3: memref<128x128xf32, #tpu.memory_space<vmem>>, %arg4: memref<128x128xf32, #tpu.memory_space<vmem>>, %arg5: memref<8x128xf32, #tpu.memory_space<vmem>>, %arg6: memref<8x128xf32, #tpu.memory_space<vmem>>) attributes {dimension_semantics = [#tpu.dimension_semantics<parallel>, #tpu.dimension_semantics<arbitrary>], iteration_bounds = array<i64: 1, 1>, scalar_prefetch = 0 : i64, scratch_operands = 1 : i64, tpu.core_type = #tpu.core_type<tc>, window_params = [{transform_indices = @transform_0, window_bounds = array<i64: 8, 128>}, {pipeline_mode = #tpu.pipeline_mode<synchronous>, transform_indices = @transform_1, window_bounds = array<i64: 128, 128>}, {transform_indices = @transform_2, window_bounds = array<i64: 128, 128>}, {transform_indices = @transform_3, window_bounds = array<i64: 8, 128>}]} {
    %c0_i32 = arith.constant 0 : i32
    %0 = arith.cmpi eq, %arg1, %c0_i32 : i32
    %1 = arith.extui %0 : i1 to i32
    %c0_i32_0 = arith.constant 0 : i32
    %2 = arith.cmpi ne, %1, %c0_i32_0 : i32
    scf.if %2 {
      %c0_6 = arith.constant 0 : index
      %c0_7 = arith.constant 0 : index
      %7 = vector.load %arg2[%c0_6, %c0_7] : memref<8x128xf32, #tpu.memory_space<vmem>>, vector<8x128xf32>
      %c0_8 = arith.constant 0 : index
      %c0_9 = arith.constant 0 : index
      %8 = vector.load %arg3[%c0_8, %c0_9] : memref<128x128xf32, #tpu.memory_space<vmem>>, vector<128x128xf32>
      %cst_10 = arith.constant dense<0.000000e+00> : vector<8x128xf32>
      %9 = tpu.matmul %7, %8, %cst_10 {dimension_numbers = #tpu.dot_dimension_numbers<[1], [0], [0], [1], [0, 0, 1, 1], [], []>} : vector<8x128xf32>, vector<128x128xf32>, vector<8x128xf32> -> vector<8x128xf32>
      %cst_11 = arith.constant 0.000000e+00 : f32
      %10 = vector.broadcast %cst_11 : f32 to vector<8x128xf32>
      %11 = arith.maximumf %9, %10 : vector<8x128xf32>
      %c0_12 = arith.constant 0 : index
      %c0_13 = arith.constant 0 : index
      %12 = vector.load %arg6[%c0_12, %c0_13] : memref<8x128xf32, #tpu.memory_space<vmem>>, vector<8x128xf32>
      tpu.vector_store %arg6[%c0_12, %c0_13], %11 {strides = array<i32>} : memref<8x128xf32, #tpu.memory_space<vmem>>, vector<8x128xf32>,
    } else {
    }
    %c0 = arith.constant 0 : index
    %c0_1 = arith.constant 0 : index
    %3 = vector.load %arg6[%c0, %c0_1] : memref<8x128xf32, #tpu.memory_space<vmem>>, vector<8x128xf32>
    %c0_2 = arith.constant 0 : index
    %c0_3 = arith.constant 0 : index
    %4 = vector.load %arg4[%c0_2, %c0_3] : memref<128x128xf32, #tpu.memory_space<vmem>>, vector<128x128xf32>
    %cst = arith.constant dense<0.000000e+00> : vector<8x128xf32>
    %5 = tpu.matmul %3, %4, %cst {dimension_numbers = #tpu.dot_dimension_numbers<[1], [0], [0], [1], [0, 0, 1, 1], [], []>} : vector<8x128xf32>, vector<128x128xf32>, vector<8x128xf32> -> vector<8x128xf32>
    %c0_4 = arith.constant 0 : index
    %c0_5 = arith.constant 0 : index
    %6 = vector.load %arg5[%c0_4, %c0_5] : memref<8x128xf32, #tpu.memory_space<vmem>>, vector<8x128xf32>
    tpu.vector_store %arg5[%c0_4, %c0_5], %5 {strides = array<i32>} : memref<8x128xf32, #tpu.memory_space<vmem>>, vector<8x128xf32>,
    return
  }
  func.func @transform_0(%arg0: i32, %arg1: i32) -> (i32, i32) {
    %c0_i32 = arith.constant 0 : i32
    %c0_i32_0 = arith.constant 0 : i32
    return %arg0, %c0_i32 : i32, i32
  }
  func.func @transform_1(%arg0: i32, %arg1: i32) -> (i32, i32) {
    %c0_i32 = arith.constant 0 : i32
    %c0_i32_0 = arith.constant 0 : i32
    %c0_i32_1 = arith.constant 0 : i32
    return %c0_i32, %c0_i32_0 : i32, i32
  }
  func.func @transform_2(%arg0: i32, %arg1: i32) -> (i32, i32) {
    %c0_i32 = arith.constant 0 : i32
    %c0_i32_0 = arith.constant 0 : i32
    return %c0_i32, %arg1 : i32, i32
  }
  func.func @transform_3(%arg0: i32, %arg1: i32) -> (i32, i32) {
    %c0_i32 = arith.constant 0 : i32
    return %arg0, %arg1 : i32, i32
  }
}

</mosaic_0001>

<bundles_post_ra>
// kernel: tpu_custom_call.1
= control target key start
LH: loop header
LB: loop body
LE: loop exit
PB: predicated region body
PF: predicated region fallthrough
CT: control target
= control target key end

     0   :  { %8 = vsyncpa [#allocation4], 0  ;;  %s523_s0 = inlined_call_operand.hbm [shape: f32[8,128], index: 0, kind: input, shape index: {}]   ;;  %s524_s1 = inlined_call_operand.hbm [shape: f32[128,128], index: 1, kind: input, shape index: {}]   ;;  %s525_s2 = inlined_call_operand.hbm [shape: f32[128,128], index: 2, kind: input, shape index: {}]   ;;  %s526_s3 = inlined_call_operand.hbm [shape: f32[8,128], index: 3, kind: output, shape index: {}]  }
   0x1   :  { %9 = vsyncpa [#allocation7], 0 }
   0x2   :  { %10 = vsyncpa [#allocation5], 0  ;;  %s449_s12 = smov [#allocation6]  }
   0x3   :  { %s26_s13 = sshll.u32 %s449_s12, 4  ;;  %s27_s13 = int_to_ptr.vmem [resolvable:$true] %s26_s13 }
   0x4   :  { %s371_s14 = scalar_lea.vmem %s27_s13, 2048  ;;  %p376_p1 = scmp.lt.s32.totalorder %s27_s13, %s27_s13 }
   0x5   :  { %p372_p0 = scmp.ne.s32.totalorder %s27_s13, %s371_s14  ;;  %p377_p2 = scmp.lt.s32.totalorder %s371_s14, %s371_s14 }
   0x7   :  { %p378_p3 = por %p377_p2, %p376_p1 }
   0x9   :  { %p379_p4 = pnand %p378_p3, %p372_p0 }
   0xb   :  { %382 = shalt.err (!%p379_p4)
}
   0xc   :  { %s450_s15 = smov 128   ;;  %s451_s16 = smov 8  }
   0xd   :  { %32 = dma.hbm_to_vmem [thread:$0]  %s524_s1, 2048, %s27_s13, [#allocation7], %s450_s15, %s450_s15, %s451_s16  }
   0xe   :  { %s452_s19 = smov [#allocation3]   ;;  %s453_s21 = smov [#allocation8]  }
   0xf   :  { %s17_s20 = sshll.u32 %s452_s19, 4  ;;  %s38_s22 = sshll.u32 %s453_s21, 4  ;;  %s18_s20 = int_to_ptr.vmem [resolvable:$true] %s17_s20  ;;  %s39_s22 = int_to_ptr.vmem [resolvable:$true] %s38_s22 }
  0x10   :  { %s391_s23 = scalar_lea.vmem %s18_s20, 128  ;;  %p396_p6 = scmp.lt.s32.totalorder %s18_s20, %s18_s20 }
  0x11   :  { %p392_p5 = scmp.ne.s32.totalorder %s18_s20, %s391_s23  ;;  %p397_p7 = scmp.lt.s32.totalorder %s391_s23, %s391_s23 }
  0x13   :  { %p398_p8 = por %p397_p7, %p396_p6 }
  0x15   :  { %p399_p9 = pnand %p398_p8, %p392_p5 }
  0x17   :  { %402 = shalt.err (!%p399_p9)
}
  0x18   :  { %20 = dma.hbm_to_vmem [thread:$0]  %s523_s0, 128, %s18_s20, [#allocation4]  }
  0x19   :  { %s411_s26 = scalar_lea.vmem %s39_s22, 2048  ;;  %p416_p11 = scmp.lt.s32.totalorder %s39_s22, %s39_s22 }
  0x1a   :  { %p412_p10 = scmp.ne.s32.totalorder %s39_s22, %s411_s26  ;;  %p417_p12 = scmp.lt.s32.totalorder %s411_s26, %s411_s26 }
  0x1c   :  { %p418_p13 = por %p417_p12, %p416_p11 }
  0x1e   :  { %p419_p0 = pnand %p418_p13, %p412_p10 }
  0x20   :  { %422 = shalt.err (!%p419_p0)
}
  0x21   :  { %44 = dma.hbm_to_vmem [thread:$0]  %s525_s2, 2048, %s39_s22, [#allocation7], %s450_s15, %s450_s15, %s451_s16  }
  0x22   :  { %443 = dma.done.wait [#allocation4], 128  }
  0x23   :  { %444 = vsyncadd [#allocation4], 4294967168 }
  0x24   :  { %445 = dma.done.wait [#allocation7], 4096  }
  0x25   :  { %446 = vsyncadd [#allocation7], 4294963200  ;;  %v454_v0 = vmov 0.0   ;;  %vm455_vm0 = vmmov 0   ;;  %v74_v1 = vld [vmem:[#allocation6 + $0x78] sm:$0xff]  ;;  %v73_v2 = vld [vmem:[#allocation6 + $0x70] sm:$0xff] }
  0x26   :  { %285 = vmatprep.subr.mxu0 %v454_v0  ;;  %317 = vmatprep.mubr.msk.f32.mxu0 %vm455_vm0, %v454_v0  ;;  %v72_v3 = vld [vmem:[#allocation6 + $0x68] sm:$0xff]  ;;  %v71_v4 = vld [vmem:[#allocation6 + $0x60] sm:$0xff]  ;;  %v163_v5 = vld [vmem:[#allocation8 + $0x78] sm:$0xff]  ;;  %s456_s0 = smov [#allocation9]  }
  0x27   :  { %320 = vmatprep.subr.mxu1 %v454_v0  ;;  %352 = vmatprep.mubr.msk.f32.mxu1 %vm455_vm0, %v454_v0  ;;  %v70_v6 = vld [vmem:[#allocation6 + $0x58] sm:$0xff]  ;;  %v162_v7 = vld [vmem:[#allocation8 + $0x70] sm:$0xff]  ;;  %v161_v8 = vld [vmem:[#allocation8 + $0x68] sm:$0xff]  ;;  %s241_s2 = sshll.u32 %s456_s0, 4  ;;  %s242_s2 = int_to_ptr.vmem [resolvable:$true] %s241_s2 }
  0x28   :  { %286 = vmatpush3.msra.mxu0 %v74_v1  ;;  %321 = vmatpush3.msra.mxu1 %v163_v5  ;;  %v69_v9 = vld [vmem:[#allocation6 + $0x50] sm:$0xff]  ;;  %v160_v10 = vld [vmem:[#allocation8 + $0x60] sm:$0xff]  ;;  %v68_v11 = vld [vmem:[#allocation6 + $0x48] sm:$0xff]  ;;  %s423_s28 = scalar_lea.vmem %s242_s2, 128  ;;  %p428_p2 = scmp.lt.s32.totalorder %s242_s2, %s242_s2 }
  0x29   :  { %287 = vmatprep.subr.mxu0 %v454_v0  ;;  %322 = vmatprep.subr.mxu1 %v454_v0  ;;  %v159_v12 = vld [vmem:[#allocation8 + $0x58] sm:$0xff]  ;;  %v67_v13 = vld [vmem:[#allocation6 + $0x40] sm:$0xff]  ;;  %v158_v14 = vld [vmem:[#allocation8 + $0x50] sm:$0xff]  ;;  %p424_p1 = scmp.ne.s32.totalorder %s242_s2, %s423_s28  ;;  %p429_p3 = scmp.lt.s32.totalorder %s423_s28, %s423_s28 }
  0x2a   :  { %288 = vmatpush3.msra.mxu0 %v73_v2  ;;  %323 = vmatpush3.msra.mxu1 %v162_v7  ;;  %v66_v15 = vld [vmem:[#allocation6 + $0x38] sm:$0xff]  ;;  %v157_v16 = vld [vmem:[#allocation8 + $0x48] sm:$0xff]  ;;  %v65_v17 = vld [vmem:[#allocation6 + $0x30] sm:$0xff] }
  0x2b   :  { %289 = vmatprep.subr.mxu0 %v454_v0  ;;  %324 = vmatprep.subr.mxu1 %v454_v0  ;;  %v156_v18 = vld [vmem:[#allocation8 + $0x40] sm:$0xff]  ;;  %v64_v19 = vld [vmem:[#allocation6 + $0x28] sm:$0xff]  ;;  %v155_v20 = vld [vmem:[#allocation8 + $0x38] sm:$0xff]  ;;  %p430_p4 = por %p429_p3, %p428_p2 }
  0x2c   :  { %290 = vmatpush3.msra.mxu0 %v72_v3  ;;  %325 = vmatpush3.msra.mxu1 %v161_v8  ;;  %v63_v21 = vld [vmem:[#allocation6 + $0x20] sm:$0xff]  ;;  %v154_v22 = vld [vmem:[#allocation8 + $0x30] sm:$0xff]  ;;  %v62_v23 = vld [vmem:[#allocation6 + $0x18] sm:$0xff] }
  0x2d   :  { %291 = vmatprep.subr.mxu0 %v454_v0  ;;  %326 = vmatprep.subr.mxu1 %v454_v0  ;;  %v153_v24 = vld [vmem:[#allocation8 + $0x28] sm:$0xff]  ;;  %v61_v25 = vld [vmem:[#allocation6 + $0x10] sm:$0xff]  ;;  %v152_v26 = vld [vmem:[#allocation8 + $0x20] sm:$0xff]  ;;  %p431_p5 = pnand %p430_p4, %p424_p1 }
  0x2e   :  { %292 = vmatpush3.msra.mxu0 %v71_v4  ;;  %327 = vmatpush3.msra.mxu1 %v160_v10  ;;  %v60_v27 = vld [vmem:[#allocation6 + $0x8] sm:$0xff]  ;;  %v151_v28 = vld [vmem:[#allocation8 + $0x18] sm:$0xff]  ;;  %v59_v29 = vld [vmem:[#allocation6] sm:$0xff] }
  0x2f   :  { %293 = vmatprep.subr.mxu0 %v454_v0  ;;  %328 = vmatprep.subr.mxu1 %v454_v0  ;;  %v58_v30 = vld [vmem:[#allocation3] sm:$0xff]  ;;  %v150_v31 = vld [vmem:[#allocation8 + $0x10] sm:$0xff]  ;;  %v149_v32 = vld [vmem:[#allocation8 + $0x8] sm:$0xff] }
  0x30   :  { %294 = vmatpush3.msra.mxu0 %v70_v6  ;;  %329 = vmatpush3.msra.mxu1 %v159_v12  ;;  %v148_v33 = vld [vmem:[#allocation8] sm:$0xff] }
  0x31   :  { %295 = vmatprep.subr.mxu0 %v454_v0  ;;  %330 = vmatprep.subr.mxu1 %v454_v0 }
  0x32   :  { %296 = vmatpush3.msra.mxu0 %v69_v9  ;;  %331 = vmatpush3.msra.mxu1 %v158_v14 }
  0x33   :  { %297 = vmatprep.subr.mxu0 %v454_v0  ;;  %332 = vmatprep.subr.mxu1 %v454_v0 }
  0x34   :  { %298 = vmatpush3.msra.mxu0 %v68_v11  ;;  %333 = vmatpush3.msra.mxu1 %v157_v16 }
  0x35   :  { %299 = vmatprep.subr.mxu0 %v454_v0  ;;  %334 = vmatprep.subr.mxu1 %v454_v0 }
  0x36   :  { %300 = vmatpush3.msra.mxu0 %v67_v13  ;;  %335 = vmatpush3.msra.mxu1 %v156_v18 }
  0x37   :  { %301 = vmatprep.subr.mxu0 %v454_v0  ;;  %336 = vmatprep.subr.mxu1 %v454_v0 }
  0x38   :  { %302 = vmatpush3.msra.mxu0 %v66_v15  ;;  %337 = vmatpush3.msra.mxu1 %v155_v20 }
  0x39   :  { %303 = vmatprep.subr.mxu0 %v454_v0  ;;  %338 = vmatprep.subr.mxu1 %v454_v0 }
  0x3a   :  { %304 = vmatpush3.msra.mxu0 %v65_v17  ;;  %339 = vmatpush3.msra.mxu1 %v154_v22 }
  0x3b   :  { %305 = vmatprep.subr.mxu0 %v454_v0  ;;  %340 = vmatprep.subr.mxu1 %v454_v0 }
  0x3c   :  { %306 = vmatpush3.msra.mxu0 %v64_v19  ;;  %341 = vmatpush3.msra.mxu1 %v153_v24 }
  0x3d   :  { %307 = vmatprep.subr.mxu0 %v454_v0  ;;  %342 = vmatprep.subr.mxu1 %v454_v0 }
  0x3e   :  { %308 = vmatpush3.msra.mxu0 %v63_v21  ;;  %343 = vmatpush3.msra.mxu1 %v152_v26 }
  0x3f   :  { %309 = vmatprep.subr.mxu0 %v454_v0  ;;  %344 = vmatprep.subr.mxu1 %v454_v0 }
  0x40   :  { %310 = vmatpush3.msra.mxu0 %v62_v23  ;;  %345 = vmatpush3.msra.mxu1 %v151_v28 }
  0x41   :  { %311 = vmatprep.subr.mxu0 %v454_v0  ;;  %346 = vmatprep.subr.mxu1 %v454_v0 }
  0x42   :  { %312 = vmatpush3.msra.mxu0 %v61_v25  ;;  %347 = vmatpush3.msra.mxu1 %v150_v31 }
  0x43   :  { %313 = vmatprep.subr.mxu0 %v454_v0  ;;  %348 = vmatprep.subr.mxu1 %v454_v0 }
  0x44   :  { %314 = vmatpush3.msra.mxu0 %v60_v27  ;;  %349 = vmatpush3.msra.mxu1 %v149_v32 }
  0x45   :  { %315 = vmatprep.subr.mxu0 %v454_v0  ;;  %350 = vmatprep.subr.mxu1 %v454_v0 }
  0x46   :  { %316 = vmatpush3.msra.mxu0 %v59_v29  ;;  %351 = vmatpush3.msra.mxu1 %v148_v33 }
  0x47   :  { %318 = vmatmul.mubr.f32.vlgmr.msra.gmra.mxu0 %v58_v30 }
 0x107   :  { %v141_v34 = vpop.f32.mrf.mxu0 }
 0x108   :  { %v145_v35 = vmax.f32 %v141_v34, 0.0 }
 0x109   :  { %v319_v36 = vpop.f32.mrf.mxu0 }
 0x10a   :  { %353 = vmatmul.mubr.f32.vlgmr.msra.gmra.mxu1 %v145_v35 }
 0x1ca   :  { %v230_v37 = vpop.f32.mrf.mxu1 }
 0x1cb   :  { %234 = vst [vmem:[#allocation9] sm:$0xff] %v230_v37 }
 0x1cc   :  { %v354_v38 = vpop.f32.mrf.mxu1 }
 0x1cd   :  { %434 = shalt.err (!%p431_p5)
}
 0x1ce   :  { %244 = dma.vmem_to_hbm [thread:$0]  %s242_s2, 128, %s526_s3, [#allocation5]  }
 0x1cf   :  { %447 = dma.done.wait [#allocation5], 128  }
 0x1d0   :  { %448 = vsyncadd [#allocation5], 4294967168 }
 0x1d1   :  { %248 = vsyncpa [#allocation4], 1 }
 0x1d2   :  { %249 = vsyncpa [#allocation7], 1 }
 0x1d3   :  { %250 = vsyncpa [#allocation5], 1 }

// kernel: tpu_custom_call.1
= control target key start
LH: loop header
LB: loop body
LE: loop exit
PB: predicated region body
PF: predicated region fallthrough
CT: control target
= control target key end

     0   :  { %8 = vsyncpa [#allocation4], 0  ;;  %s523_s0 = inlined_call_operand.hbm [shape: f32[8,128], index: 0, kind: input, shape index: {}]   ;;  %s524_s1 = inlined_call_operand.hbm [shape: f32[128,128], index: 1, kind: input, shape index: {}]   ;;  %s525_s2 = inlined_call_operand.hbm [shape: f32[128,128], index: 2, kind: input, shape index: {}]   ;;  %s526_s3 = inlined_call_operand.hbm [shape: f32[8,128], index: 3, kind: output, shape index: {}]  }
   0x1   :  { %9 = vsyncpa [#allocation7], 0 }
   0x2   :  { %10 = vsyncpa [#allocation5], 0  ;;  %s449_s12 = smov [#allocation6]  }
   0x3   :  { %s26_s13 = sshll.u32 %s449_s12, 4  ;;  %s27_s13 = int_to_ptr.vmem [resolvable:$true] %s26_s13 }
   0x4   :  { %s371_s14 = scalar_lea.vmem %s27_s13, 2048  ;;  %p376_p1 = scmp.lt.s32.totalorder %s27_s13, %s27_s13 }
   0x5   :  { %p372_p0 = scmp.ne.s32.totalorder %s27_s13, %s371_s14  ;;  %p377_p2 = scmp.lt.s32.totalorder %s371_s14, %s371_s14 }
   0x7   :  { %p378_p3 = por %p377_p2, %p376_p1 }
   0x9   :  { %p379_p4 = pnand %p378_p3, %p372_p0 }
   0xb   :  { %382 = shalt.err (!%p379_p4)
}
   0xc   :  { %s450_s15 = smov 128   ;;  %s451_s16 = smov 8  }
   0xd   :  { %32 = dma.hbm_to_vmem [thread:$0]  %s524_s1, 2048, %s27_s13, [#allocation7], %s450_s15, %s450_s15, %s451_s16  }
   0xe   :  { %s452_s19 = smov [#allocation3]   ;;  %s453_s21 = smov [#allocation8]  }
   0xf   :  { %s17_s20 = sshll.u32 %s452_s19, 4  ;;  %s38_s22 = sshll.u32 %s453_s21, 4  ;;  %s18_s20 = int_to_ptr.vmem [resolvable:$true] %s17_s20  ;;  %s39_s22 = int_to_ptr.vmem [resolvable:$true] %s38_s22 }
  0x10   :  { %s391_s23 = scalar_lea.vmem %s18_s20, 128  ;;  %p396_p6 = scmp.lt.s32.totalorder %s18_s20, %s18_s20 }
  0x11   :  { %p392_p5 = scmp.ne.s32.totalorder %s18_s20, %s391_s23  ;;  %p397_p7 = scmp.lt.s32.totalorder %s391_s23, %s391_s23 }
  0x13   :  { %p398_p8 = por %p397_p7, %p396_p6 }
  0x15   :  { %p399_p9 = pnand %p398_p8, %p392_p5 }
  0x17   :  { %402 = shalt.err (!%p399_p9)
}
  0x18   :  { %20 = dma.hbm_to_vmem [thread:$0]  %s523_s0, 128, %s18_s20, [#allocation4]  }
  0x19   :  { %s411_s26 = scalar_lea.vmem %s39_s22, 2048  ;;  %p416_p11 = scmp.lt.s32.totalorder %s39_s22, %s39_s22 }
  0x1a   :  { %p412_p10 = scmp.ne.s32.totalorder %s39_s22, %s411_s26  ;;  %p417_p12 = scmp.lt.s32.totalorder %s411_s26, %s411_s26 }
  0x1c   :  { %p418_p13 = por %p417_p12, %p416_p11 }
  0x1e   :  { %p419_p0 = pnand %p418_p13, %p412_p10 }
  0x20   :  { %422 = shalt.err (!%p419_p0)
}
  0x21   :  { %44 = dma.hbm_to_vmem [thread:$0]  %s525_s2, 2048, %s39_s22, [#allocation7], %s450_s15, %s450_s15, %s451_s16  }
  0x22   :  { %443 = dma.done.wait [#allocation4], 128  }
  0x23   :  { %444 = vsyncadd [#allocation4], 4294967168 }
  0x24   :  { %445 = dma.done.wait [#allocation7], 4096  }
  0x25   :  { %446 = vsyncadd [#allocation7], 4294963200  ;;  %v454_v0 = vmov 0.0   ;;  %vm455_vm0 = vmmov 0   ;;  %v74_v1 = vld [vmem:[#allocation6 + $0x78] sm:$0xff]  ;;  %v73_v2 = vld [vmem:[#allocation6 + $0x70] sm:$0xff] }
  0x26   :  { %285 = vmatprep.subr.mxu0 %v454_v0  ;;  %317 = vmatprep.mubr.msk.f32.mxu0 %vm455_vm0, %v454_v0  ;;  %v72_v3 = vld [vmem:[#allocation6 + $0x68] sm:$0xff]  ;;  %v71_v4 = vld [vmem:[#allocation6 + $0x60] sm:$0xff]  ;;  %v163_v5 = vld [vmem:[#allocation8 + $0x78] sm:$0xff]  ;;  %s456_s0 = smov [#allocation9]  }
  0x27   :  { %320 = vmatprep.subr.mxu1 %v454_v0  ;;  %352 = vmatprep.mubr.msk.f32.mxu1 %vm455_vm0, %v454_v0  ;;  %v70_v6 = vld [vmem:[#allocation6 + $0x58] sm:$0xff]  ;;  %v162_v7 = vld [vmem:[#allocation8 + $0x70] sm:$0xff]  ;;  %v161_v8 = vld [vmem:[#allocation8 + $0x68] sm:$0xff]  ;;  %s241_s2 = sshll.u32 %s456_s0, 4  ;;  %s242_s2 = int_to_ptr.vmem [resolvable:$true] %s241_s2 }
  0x28   :  { %286 = vmatpush3.msra.mxu0 %v74_v1  ;;  %321 = vmatpush3.msra.mxu1 %v163_v5  ;;  %v69_v9 = vld [vmem:[#allocation6 + $0x50] sm:$0xff]  ;;  %v160_v10 = vld [vmem:[#allocation8 + $0x60] sm:$0xff]  ;;  %v68_v11 = vld [vmem:[#allocation6 + $0x48] sm:$0xff]  ;;  %s423_s28 = scalar_lea.vmem %s242_s2, 128  ;;  %p428_p2 = scmp.lt.s32.totalorder %s242_s2, %s242_s2 }
  0x29   :  { %287 = vmatprep.subr.mxu0 %v454_v0  ;;  %322 = vmatprep.subr.mxu1 %v454_v0  ;;  %v159_v12 = vld [vmem:[#allocation8 + $0x58] sm:$0xff]  ;;  %v67_v13 = vld [vmem:[#allocation6 + $0x40] sm:$0xff]  ;;  %v158_v14 = vld [vmem:[#allocation8 + $0x50] sm:$0xff]  ;;  %p424_p1 = scmp.ne.s32.totalorder %s242_s2, %s423_s28  ;;  %p429_p3 = scmp.lt.s32.totalorder %s423_s28, %s423_s28 }
  0x2a   :  { %288 = vmatpush3.msra.mxu0 %v73_v2  ;;  %323 = vmatpush3.msra.mxu1 %v162_v7  ;;  %v66_v15 = vld [vmem:[#allocation6 + $0x38] sm:$0xff]  ;;  %v157_v16 = vld [vmem:[#allocation8 + $0x48] sm:$0xff]  ;;  %v65_v17 = vld [vmem:[#allocation6 + $0x30] sm:$0xff] }
  0x2b   :  { %289 = vmatprep.subr.mxu0 %v454_v0  ;;  %324 = vmatprep.subr.mxu1 %v454_v0  ;;  %v156_v18 = vld [vmem:[#allocation8 + $0x40] sm:$0xff]  ;;  %v64_v19 = vld [vmem:[#allocation6 + $0x28] sm:$0xff]  ;;  %v155_v20 = vld [vmem:[#allocation8 + $0x38] sm:$0xff]  ;;  %p430_p4 = por %p429_p3, %p428_p2 }
  0x2c   :  { %290 = vmatpush3.msra.mxu0 %v72_v3  ;;  %325 = vmatpush3.msra.mxu1 %v161_v8  ;;  %v63_v21 = vld [vmem:[#allocation6 + $0x20] sm:$0xff]  ;;  %v154_v22 = vld [vmem:[#allocation8 + $0x30] sm:$0xff]  ;;  %v62_v23 = vld [vmem:[#allocation6 + $0x18] sm:$0xff] }
  0x2d   :  { %291 = vmatprep.subr.mxu0 %v454_v0  ;;  %326 = vmatprep.subr.mxu1 %v454_v0  ;;  %v153_v24 = vld [vmem:[#allocation8 + $0x28] sm:$0xff]  ;;  %v61_v25 = vld [vmem:[#allocation6 + $0x10] sm:$0xff]  ;;  %v152_v26 = vld [vmem:[#allocation8 + $0x20] sm:$0xff]  ;;  %p431_p5 = pnand %p430_p4, %p424_p1 }
  0x2e   :  { %292 = vmatpush3.msra.mxu0 %v71_v4  ;;  %327 = vmatpush3.msra.mxu1 %v160_v10  ;;  %v60_v27 = vld [vmem:[#allocation6 + $0x8] sm:$0xff]  ;;  %v151_v28 = vld [vmem:[#allocation8 + $0x18] sm:$0xff]  ;;  %v59_v29 = vld [vmem:[#allocation6] sm:$0xff] }
  0x2f   :  { %293 = vmatprep.subr.mxu0 %v454_v0  ;;  %328 = vmatprep.subr.mxu1 %v454_v0  ;;  %v58_v30 = vld [vmem:[#allocation3] sm:$0xff]  ;;  %v150_v31 = vld [vmem:[#allocation8 + $0x10] sm:$0xff]  ;;  %v149_v32 = vld [vmem:[#allocation8 + $0x8] sm:$0xff] }
  0x30   :  { %294 = vmatpush3.msra.mxu0 %v70_v6  ;;  %329 = vmatpush3.msra.mxu1 %v159_v12  ;;  %v148_v33 = vld [vmem:[#allocation8] sm:$0xff] }
  0x31   :  { %295 = vmatprep.subr.mxu0 %v454_v0  ;;  %330 = vmatprep.subr.mxu1 %v454_v0 }
  0x32   :  { %296 = vmatpush3.msra.mxu0 %v69_v9  ;;  %331 = vmatpush3.msra.mxu1 %v158_v14 }
  0x33   :  { %297 = vmatprep.subr.mxu0 %v454_v0  ;;  %332 = vmatprep.subr.mxu1 %v454_v0 }
  0x34   :  { %298 = vmatpush3.msra.mxu0 %v68_v11  ;;  %333 = vmatpush3.msra.mxu1 %v157_v16 }
  0x35   :  { %299 = vmatprep.subr.mxu0 %v454_v0  ;;  %334 = vmatprep.subr.mxu1 %v454_v0 }
  0x36   :  { %300 = vmatpush3.msra.mxu0 %v67_v13  ;;  %335 = vmatpush3.msra.mxu1 %v156_v18 }
  0x37   :  { %301 = vmatprep.subr.mxu0 %v454_v0  ;;  %336 = vmatprep.subr.mxu1 %v454_v0 }
  0x38   :  { %302 = vmatpush3.msra.mxu0 %v66_v15  ;;  %337 = vmatpush3.msra.mxu1 %v155_v20 }
  0x39   :  { %303 = vmatprep.subr.mxu0 %v454_v0  ;;  %338 = vmatprep.subr.mxu1 %v454_v0 }
  0x3a   :  { %304 = vmatpush3.msra.mxu0 %v65_v17  ;;  %339 = vmatpush3.msra.mxu1 %v154_v22 }
  0x3b   :  { %305 = vmatprep.subr.mxu0 %v454_v0  ;;  %340 = vmatprep.subr.mxu1 %v454_v0 }
  0x3c   :  { %306 = vmatpush3.msra.mxu0 %v64_v19  ;;  %341 = vmatpush3.msra.mxu1 %v153_v24 }
  0x3d   :  { %307 = vmatprep.subr.mxu0 %v454_v0  ;;  %342 = vmatprep.subr.mxu1 %v454_v0 }
  0x3e   :  { %308 = vmatpush3.msra.mxu0 %v63_v21  ;;  %343 = vmatpush3.msra.mxu1 %v152_v26 }
  0x3f   :  { %309 = vmatprep.subr.mxu0 %v454_v0  ;;  %344 = vmatprep.subr.mxu1 %v454_v0 }
  0x40   :  { %310 = vmatpush3.msra.mxu0 %v62_v23  ;;  %345 = vmatpush3.msra.mxu1 %v151_v28 }
  0x41   :  { %311 = vmatprep.subr.mxu0 %v454_v0  ;;  %346 = vmatprep.subr.mxu1 %v454_v0 }
  0x42   :  { %312 = vmatpush3.msra.mxu0 %v61_v25  ;;  %347 = vmatpush3.msra.mxu1 %v150_v31 }
  0x43   :  { %313 = vmatprep.subr.mxu0 %v454_v0  ;;  %348 = vmatprep.subr.mxu1 %v454_v0 }
  0x44   :  { %314 = vmatpush3.msra.mxu0 %v60_v27  ;;  %349 = vmatpush3.msra.mxu1 %v149_v32 }
  0x45   :  { %315 = vmatprep.subr.mxu0 %v454_v0  ;;  %350 = vmatprep.subr.mxu1 %v454_v0 }
  0x46   :  { %316 = vmatpush3.msra.mxu0 %v59_v29  ;;  %351 = vmatpush3.msra.mxu1 %v148_v33 }
  0x47   :  { %318 = vmatmul.mubr.f32.vlgmr.msra.gmra.mxu0 %v58_v30 }
 0x107   :  { %v141_v34 = vpop.f32.mrf.mxu0 }
 0x108   :  { %v145_v35 = vmax.f32 %v141_v34, 0.0 }
 0x109   :  { %v319_v36 = vpop.f32.mrf.mxu0 }
 0x10a   :  { %353 = vmatmul.mubr.f32.vlgmr.msra.gmra.mxu1 %v145_v35 }
 0x1ca   :  { %v230_v37 = vpop.f32.mrf.mxu1 }
 0x1cb   :  { %234 = vst [vmem:[#allocation9] sm:$0xff] %v230_v37 }
 0x1cc   :  { %v354_v38 = vpop.f32.mrf.mxu1 }
 0x1cd   :  { %434 = shalt.err (!%p431_p5)
}
 0x1ce   :  { %244 = dma.vmem_to_hbm [thread:$0]  %s242_s2, 128, %s526_s3, [#allocation5]  }
 0x1cf   :  { %447 = dma.done.wait [#allocation5], 128  }
 0x1d0   :  { %448 = vsyncadd [#allocation5], 4294967168 }
 0x1d1   :  { %248 = vsyncpa [#allocation4], 1 }
 0x1d2   :  { %249 = vsyncpa [#allocation7], 1 }
 0x1d3   :  { %250 = vsyncpa [#allocation5], 1 }

</bundles_post_ra>
